<compile_context>
chip_gen: v7x
topology: tpu7x:2x2x1
jax: 0.10.0
libtpu: 0.0.40
codegen_flags: <defaults>
</compile_context>

<pallas_src>
import functools

import jax
import jax.numpy as jnp
from jax.experimental import pallas as pl
from jax.experimental.pallas import tpu as pltpu


def _round_up(x, m):
    return (x + m - 1) // m * m


def _pick_tile(dim, pref, align):
    """Largest t <= pref with dim % t == 0 and t % align == 0, else full dim."""
    t = pref
    while t >= align:
        if dim % t == 0 and t % align == 0:
            return t
        t //= 2
    return dim


# ----------------------------------------------------------------------------
# Kernel 1: dense linear  y = x @ W_t + b  (W_t is K-major, pre-transposed once)
#   Full-K blocks: no reduction grid axis, no accumulator scratch, one store.
# ----------------------------------------------------------------------------
def _linear_kernel(x_ref, w_ref, b_ref, o_ref):
    o_ref[...] = (
        jnp.dot(x_ref[...], w_ref[...], preferred_element_type=jnp.float32)
        + b_ref[...]
    ).astype(o_ref.dtype)


def linear(x2d, w_t, b, *, tm_pref=256, tn_pref=512):
    """x2d: (M, K); w_t: (K, N_out) K-major; b: (N_out,) -> (M, N_out)."""
    M, K = x2d.shape
    Nout = w_t.shape[1]
    sub = 16 if x2d.dtype == jnp.bfloat16 else 8  # sublane alignment

    # Ragged M: pad up to the tile instead of shrinking the tile.
    tm = min(tm_pref, _round_up(M, sub))
    M_pad = _round_up(M, tm)
    if M_pad != M:
        x2d = jnp.pad(x2d, ((0, M_pad - M), (0, 0)))

    tn = _pick_tile(Nout, tn_pref, 128)

    # Full-K blocks: at ViT sizes (K = E <= ~1024) double-buffered x/w/out blocks
    # stay well under the default scoped-VMEM budget on v5e/v6e/v7x.
    out = pl.pallas_call(
        _linear_kernel,
        out_shape=jax.ShapeDtypeStruct((M_pad, Nout), x2d.dtype),
        grid_spec=pltpu.PrefetchScalarGridSpec(
            num_scalar_prefetch=0,
            grid=(M_pad // tm, Nout // tn),
            in_specs=[
                pl.BlockSpec((tm, K), lambda i, j: (i, 0)),
                pl.BlockSpec((K, tn), lambda i, j: (0, j)),
                pl.BlockSpec((1, tn), lambda i, j: (0, j)),
            ],
            out_specs=pl.BlockSpec((tm, tn), lambda i, j: (i, j)),
        ),
        compiler_params=pltpu.CompilerParams(
            dimension_semantics=("parallel", "parallel")),
    )(x2d, w_t, b.reshape(1, Nout))
    return out[:M] if M_pad != M else out


# ----------------------------------------------------------------------------
# Kernel 2: fused per-batch attention + output projection.
#   Per head h (static unroll, Ref-window loads only):
#     e      = exp(q_h k_h^T - rowmax)            (N, N) f32
#     ctx_h  = (e @ v_h) * (1/rowsum)             (N, D), normalization deferred
#     acc   += ctx_h @ Wp_scaled[h*D:(h+1)*D, :]  split-K projection over heads
#   (1/sqrt(E) is folded into Wp_scaled at setup.)
# ----------------------------------------------------------------------------
def _attn_proj_kernel(qkv_ref, wp_ref, bp_ref, o_ref, acc_ref, *,
                      num_heads, emb_size):
    H, E = num_heads, emb_size
    D = E // H

    acc_ref[...] = jnp.zeros_like(acc_ref)

    for h in range(H):                                  # static unroll
        lo = h * D
        qh = qkv_ref[0, :, lo:lo + D]                   # (N, D) on-demand loads
        kh = qkv_ref[0, :, E + lo:E + lo + D]           # (N, D)
        vh = qkv_ref[0, :, 2 * E + lo:2 * E + lo + D]   # (N, D)

        energy = jax.lax.dot_general(                   # (N, N), f32
            qh, kh, (((1,), (1,)), ((), ())),
            preferred_element_type=jnp.float32)

        m = jnp.max(energy, axis=-1, keepdims=True)
        e = jnp.exp(energy - m)
        s = jnp.sum(e, axis=-1, keepdims=True)

        # Deferred softmax normalization: P@V first, then one (N, D) row scale.
        ctx = jnp.dot(e.astype(vh.dtype), vh,
                      preferred_element_type=jnp.float32)      # (N, D) f32
        ctx = ctx * pl.reciprocal(s, approx=True)              # EUP reciprocal

        # Split-K output projection over heads into the f32 VMEM accumulator.
        acc_ref[...] += jax.lax.dot_general(
            ctx.astype(wp_ref.dtype), wp_ref[lo:lo + D, :],
            (((1,), (0,)), ((), ())),
            preferred_element_type=jnp.float32)

    o_ref[0] = (acc_ref[...] + bp_ref[...]).astype(o_ref.dtype)


def attention_projection(qkv, wp_t_scaled, bp, num_heads, emb_size):
    """qkv: (B, N, 3E); wp_t_scaled: (E, E) K-major with 1/sqrt(E) folded in."""
    B, N, E3 = qkv.shape
    E = emb_size
    kernel = functools.partial(_attn_proj_kernel, num_heads=num_heads, emb_size=E)
    return pl.pallas_call(
        kernel,
        out_shape=jax.ShapeDtypeStruct((B, N, E), qkv.dtype),
        grid_spec=pltpu.PrefetchScalarGridSpec(
            num_scalar_prefetch=0,
            grid=(B,),
            in_specs=[
                pl.BlockSpec((1, N, E3), lambda b: (b, 0, 0)),
                pl.BlockSpec((E, E), lambda b: (0, 0)),   # resident across grid
                pl.BlockSpec((1, E), lambda b: (0, 0)),   # resident across grid
            ],
            out_specs=pl.BlockSpec((1, N, E), lambda b: (b, 0, 0)),
            scratch_shapes=[pltpu.VMEM((N, E), jnp.float32)],
        ),
        compiler_params=pltpu.CompilerParams(
            dimension_semantics=("parallel",)),
    )(qkv, wp_t_scaled, bp.reshape(1, E))


# ----------------------------------------------------------------------------
# Full module forward
# ----------------------------------------------------------------------------
def multi_head_attention(x, params, num_heads, *, compute_dtype=None):
    """x: (B, N, E) -> (B, N, E).

    compute_dtype=jnp.bfloat16 runs the MXU matmuls in bf16 (f32 accumulation,
    f32 softmax statistics); None keeps everything f32.
    """
    B, N, E = x.shape
    inv_scale = 1.0 / (float(E) ** 0.5)

    # One-time parameter prep (in a real model done at setup, not per forward):
    # fused QKV weight stored K-major, output projection stored K-major with the
    # module's post-softmax 1/sqrt(E) scale folded in.
    w_qkv_t = jnp.concatenate(
        [params["wq"].T, params["wk"].T, params["wv"].T], axis=1)   # (E, 3E)
    b_qkv = jnp.concatenate([params["bq"], params["bk"], params["bv"]], axis=0)
    wp_t_scaled = params["wp"].T * inv_scale                        # (E, E)
    bp = params["bp"]

    orig_dtype = x.dtype
    if compute_dtype is not None:
        x = x.astype(compute_dtype)
        w_qkv_t = w_qkv_t.astype(compute_dtype)
        wp_t_scaled = wp_t_scaled.astype(compute_dtype)

    x2d = x.reshape(B * N, E)
    qkv = linear(x2d, w_qkv_t, b_qkv).reshape(B, N, 3 * E)          # (B, N, 3E)
    out = attention_projection(qkv, wp_t_scaled, bp, num_heads, E)  # (B, N, E)
    return out.astype(orig_dtype) if compute_dtype is not None else out


# ----------------------------------------------------------------------------
# Pure-JAX reference (for correctness check)
# ----------------------------------------------------------------------------
def reference_mha(x, params, num_heads):
    B, N, E = x.shape
    H = num_heads
    D = E // H

    def lin(t, w, b):
        return t @ w.T + b

    q = lin(x, params["wq"], params["bq"]).reshape(B, N, H, D).transpose(0, 2, 1, 3)
    k = lin(x, params["wk"], params["bk"]).reshape(B, N, H, D).transpose(0, 2, 1, 3)
    v = lin(x, params["wv"], params["bv"]).reshape(B, N, H, D).transpose(0, 2, 1, 3)
    energy = jnp.einsum("bhqd,bhkd->bhqk", q, k)
    att = jax.nn.softmax(energy, axis=-1) / (E ** 0.5)   # module quirk: post-softmax scale
    out = jnp.einsum("bhal,bhlv->bhav", att, v)
    out = out.transpose(0, 2, 1, 3).reshape(B, N, E)
    return lin(out, params["wp"], params["bp"])


if __name__ == "__main__":
    # Small shapes consistent with the module: 8 heads, head_dim=16.
    B, N, E, H = 2, 8, 128, 8

    key = jax.random.PRNGKey(0)
    ks = jax.random.split(key, 9)
    init = lambda k, shape: jax.random.normal(k, shape, jnp.float32) * 0.05

    params = {
        "wq": init(ks[0], (E, E)), "bq": init(ks[1], (E,)),
        "wk": init(ks[2], (E, E)), "bk": init(ks[3], (E,)),
        "wv": init(ks[4], (E, E)), "bv": init(ks[5], (E,)),
        "wp": init(ks[6], (E, E)), "bp": init(ks[7], (E,)),
    }
    x = jax.random.normal(ks[8], (B, N, E), jnp.float32)

    ref = reference_mha(x, params, num_heads=H)

    # f32 path (exact math; approx reciprocal ~2^-12 rel error)
    out = jax.block_until_ready(multi_head_attention(x, params, num_heads=H))
    assert out.shape == (B, N, E)
    assert jnp.max(jnp.abs(out - ref)) < 1e-3, "f32 mismatch vs reference"

    # bf16 MXU path (f32 accumulation + f32 softmax stats) -> looser tolerance
    out_bf16 = jax.block_until_ready(
        multi_head_attention(x, params, num_heads=H, compute_dtype=jnp.bfloat16))
    assert jnp.max(jnp.abs(out_bf16 - ref)) < 3e-2, "bf16 mismatch vs reference"

    print("KERNEL_OK")
</pallas_src>

<mosaic_0001>
module attributes {stable_mosaic.version = 11 : i64} {
  func.func @_linear_kernel(%arg0: i32, %arg1: i32, %arg2: memref<16x128xf32, #tpu.memory_space<vmem>>, %arg3: memref<128x128xf32, #tpu.memory_space<vmem>>, %arg4: memref<1x128xf32, #tpu.memory_space<vmem>>, %arg5: memref<16x128xf32, #tpu.memory_space<vmem>>) attributes {dimension_semantics = [#tpu.dimension_semantics<parallel>, #tpu.dimension_semantics<parallel>], iteration_bounds = array<i64: 1, 3>, scalar_prefetch = 0 : i64, scratch_operands = 0 : i64, tpu.core_type = #tpu.core_type<tc>, window_params = [{transform_indices = @transform_0, window_bounds = array<i64: 16, 128>}, {transform_indices = @transform_1, window_bounds = array<i64: 128, 128>}, {transform_indices = @transform_2, window_bounds = array<i64: 1, 128>}, {transform_indices = @transform_3, window_bounds = array<i64: 16, 128>}]} {
    %c0 = arith.constant 0 : index
    %c0_0 = arith.constant 0 : index
    %0 = vector.load %arg2[%c0, %c0_0] : memref<16x128xf32, #tpu.memory_space<vmem>>, vector<16x128xf32>
    %c0_1 = arith.constant 0 : index
    %c0_2 = arith.constant 0 : index
    %1 = vector.load %arg3[%c0_1, %c0_2] : memref<128x128xf32, #tpu.memory_space<vmem>>, vector<128x128xf32>
    %cst = arith.constant dense<0.000000e+00> : vector<16x128xf32>
    %2 = tpu.matmul %0, %1, %cst {dimension_numbers = #tpu.dot_dimension_numbers<[1], [0], [0], [1], [0, 0, 1, 1], [], []>} : vector<16x128xf32>, vector<128x128xf32>, vector<16x128xf32> -> vector<16x128xf32>
    %c0_3 = arith.constant 0 : index
    %c0_4 = arith.constant 0 : index
    %3 = vector.load %arg4[%c0_3, %c0_4] : memref<1x128xf32, #tpu.memory_space<vmem>>, vector<1x128xf32>
    %4 = vector.broadcast %3 : vector<1x128xf32> to vector<16x128xf32>
    %5 = arith.addf %2, %4 : vector<16x128xf32>
    %c0_5 = arith.constant 0 : index
    %c0_6 = arith.constant 0 : index
    %6 = vector.load %arg5[%c0_5, %c0_6] : memref<16x128xf32, #tpu.memory_space<vmem>>, vector<16x128xf32>
    tpu.vector_store %arg5[%c0_5, %c0_6], %5 {strides = array<i32>} : memref<16x128xf32, #tpu.memory_space<vmem>>, vector<16x128xf32>,
    return
  }
  func.func @transform_0(%arg0: i32, %arg1: i32) -> (i32, i32) {
    %c0_i32 = arith.constant 0 : i32
    %c0_i32_0 = arith.constant 0 : i32
    return %arg0, %c0_i32 : i32, i32
  }
  func.func @transform_1(%arg0: i32, %arg1: i32) -> (i32, i32) {
    %c0_i32 = arith.constant 0 : i32
    %c0_i32_0 = arith.constant 0 : i32
    return %c0_i32, %arg1 : i32, i32
  }
  func.func @transform_2(%arg0: i32, %arg1: i32) -> (i32, i32) {
    %c0_i32 = arith.constant 0 : i32
    %c0_i32_0 = arith.constant 0 : i32
    return %c0_i32, %arg1 : i32, i32
  }
  func.func @transform_3(%arg0: i32, %arg1: i32) -> (i32, i32) {
    %c0_i32 = arith.constant 0 : i32
    return %arg0, %arg1 : i32, i32
  }
}

</mosaic_0001>

<bundles_post_ra>
// kernel: tpu_custom_call.1
= control target key start
LH: loop header
LB: loop body
LE: loop exit
PB: predicated region body
PF: predicated region fallthrough
CT: control target
= control target key end

     0   :  { %8 = vsyncpa [#allocation3], 0  ;;  %s1060_s0 = inlined_call_operand.hbm [shape: f32[16,128], index: 0, kind: input, shape index: {}]   ;;  %s1061_s1 = inlined_call_operand.hbm [shape: f32[128,384], index: 1, kind: input, shape index: {}]   ;;  %s1062_s2 = inlined_call_operand.vmem [shape: f32[1,384], index: 2, kind: input, shape index: {}]   ;;  %s1063_s3 = inlined_call_operand.hbm [shape: f32[16,384], index: 3, kind: output, shape index: {}]  }
   0x1   :  { %9 = vsyncpa [#allocation6], 0 }
   0x2   :  { %11 = vsyncpa [#allocation6 + $0x1], 0 }
   0x3   :  { %12 = vsyncpa [#allocation4], 0 }
   0x4   :  { %14 = vsyncpa [#allocation4 + $0x1], 0  ;;  %s820_s12 = smov 0   ;;  %s822_s13 = smov 0  }
   0x5   :  { %s824_s14 = smov 0   ;;  %s826_s15 = smov 0  }
   0x6   :  { %s828_s16 = smov 0   ;;  %s830_s17 = smov 0  }
   0x7 LB: > { %s465_s18 = sadd.s32 4294967295, %s789_s17   ;;  %s466_s19 = sadd.s32 4294967294, %s789_s17   ;;  %s789_s17 = sphi %s830_s17, %s20_s17   ;;  %s785_s16 = sphi %s828_s16, %s1090_s16   ;;  %s781_s15 = sphi %s826_s15, %s1089_s15   ;;  %s777_s14 = sphi %s824_s14, %s1088_s14   ;;  %s773_s13 = sphi %s822_s13, %s1087_s13   ;;  %s769_s12 = sphi %s820_s12, %s1086_s12  }
   0x8   : > { %p72_p0 = scmp.ne.s32.totalorder %s777_s14, %s773_s13  ;;  %p73_p1 = scmp.eq.s32.totalorder %s789_s17, 0 }
   0x9   : > { %p78_p2 = scmp.ne.s32.totalorder %s773_s13, %s769_s12  ;;  %p857_p3 = scmp.eq.s32.totalorder %s465_s18, 0 }
   0xa   : > { %p861_p4 = por %p73_p1, %p72_p0  ;;  %p130_p5 = scmp.eq.s32.totalorder %s465_s18, 2 }
   0xb   : > { %s1071_s20 = scalar_select %p857_p3, 1, 0 }
   0xc   : > { %p867_p6 = por %p857_p3, %p78_p2  ;;  %p136_p7 = scmp.eq.s32.totalorder %s466_s19, 2 }
   0xd   : > { %p871_p8 = por %p130_p5, %p72_p0  ;;  %p467_p9 = scmp.ge.s32.totalorder %s789_s17, 1 }
   0xe   : > { %s1073_s22 = scalar_select %p867_p6, 1, 0 }
   0xf   : > { %s1074_s23 = scalar_select %p871_p8, 1, 0 }
  0x10   : > { %p876_p10 = por %p136_p7, %p78_p2  ;;  %p143_p11 = scmp.lt.s32.totalorder %s789_s17, 4 }
  0x11   : > { %s791_s26 = smov [#allocation2]   ;;  %p587_p0 = scmp.lt.s32.totalorder %s789_s17, 3 }
  0x12   : > { %s1075_s24 = scalar_select %p876_p10, 1, 0 }
  0x13   : > { %p881_p12 = pnand %p467_p9, %p143_p11  ;;  %s158_s27 = sshll.u32 %s791_s26, 4  ;;  %s159_s27 = int_to_ptr.vmem [resolvable:$true] %s158_s27 }
  0x14   : > { %p896_p2 = pnand %p587_p0, %p861_p4  ;;  %s29_s30 = sadd.s32 1, %s785_s16 }
  0x15   : > { %s1076_s25 = scalar_select %p881_p12, 1, 0 }
  0x16   : > { %p574_p13 = pneg %p881_p12  ;;  %s645_s6 = scalar_lea.hbm %s1060_s0, 256 }
  0x17   : > { %s1078_s29 = scalar_select %p896_p2, 1, 0 }
  0x18   : > { %p890_p1 = pnand %p574_p13, %p857_p3  ;;  %p646_p5 = scmp.ne.s32.totalorder %s1060_s0, %s645_s6 }
  0x19   : > { %p652_p4 = scmp.lt.u32.totalorder %s645_s6, %s1060_s0 }
  0x1a   : > { %p647_p7 = pneg %p890_p1 }
  0x1c   : > { %p648_p9 = pnand %p647_p7, %p646_p5 }
  0x1e   : > { %p649_p11 = pneg %p648_p9 }
  0x20   : > { %p654_p13 = pnand %p652_p4, %p649_p11 }
  0x22   : > { %657 = shalt.err (!%p654_p13)
}
  0x23   : > { %s658_s11 = scalar_lea.vmem %s159_s27, 256  ;;  %p666_p6 = scmp.lt.s32.totalorder %s159_s27, %s159_s27 }
  0x24   : > { %p659_p0 = scmp.ne.s32.totalorder %s159_s27, %s658_s11  ;;  %p667_p3 = scmp.lt.s32.totalorder %s658_s11, %s658_s11 }
  0x26   : > { %p661_p10 = pnand %p659_p0, %p647_p7  ;;  %p668_p12 = por %p667_p3, %p666_p6 }
  0x28   : > { %p662_p8 = pneg %p661_p10 }
  0x2a   : > { %p669_p2 = pnand %p668_p12, %p662_p8 }
  0x2c   : > { %672 = shalt.err (!%p669_p2)
}
  0x2d   : > { %s1070_s18 = smov 128   ;;  %s793_s19 = smov 8  }
  0x2e   : > { %577 = dma.hbm_to_vmem [thread:$0]  (!%p890_p1), %s1060_s0, 256, %s159_s27, [#allocation3], %s1070_s18, %s1070_s18, %s793_s19  }
  0x2f   : > { %p30_p10 = scmp.ge.s32.totalorder %s29_s30, 3  ;;  %s65_s4 = sadd.s32 1, %s777_s14 }
  0x30   : > { %s172_s5 = sand.u32 1, %s777_s14   ;;  %s471_s8 = sshll.u32 %s785_s16, 7 }
  0x31   : > { %s1092_s30 = smov (%p30_p10, %s29_s30), 0  ;;  %s470_s6 = sshll.u32 %s172_s5, 7 }
  0x32   : > { %s62_s7 = ssub.s32 %s785_s16, %s1092_s30  ;;  %s930_s10 = scalar_lea.hbm %s1061_s1, %s471_s8 }
  0x33   : > { %p63_p3 = scmp.eq.s32.totalorder %s62_s7, 0  ;;  %s176_s27 = scalar_lea.vmem [#allocation5], %s470_s6 }
  0x34   : > { %s182_s11 = sshll.u32 %s176_s27, 4  ;;  %s937_s26 = scalar_lea.sflag [#allocation6], %s172_s5  ;;  %s935_s11 = int_to_ptr.vmem [resolvable:$true] %s182_s11 }
  0x35   : > { %s933_s21 = scalar_select %p63_p3, %s777_s14, %s65_s4  }
  0x36   : > { %s673_s18 = scalar_lea.hbm %s930_s10, 2048  ;;  %p1079_p8 = scmp.ne.s32.totalorder %s1078_s29, 0 }
  0x37   : > { %p674_p6 = scmp.ne.s32.totalorder %s930_s10, %s673_s18  ;;  %s678_s28 = scalar_lea.hbm %s1061_s1, 6144 }
  0x38   : > { %p675_p12 = pneg %p1079_p8  ;;  %p679_p5 = scmp.lt.u32.totalorder %s930_s10, %s1061_s1 }
  0x39   : > { %p680_p7 = scmp.lt.u32.totalorder %s678_s28, %s673_s18  ;;  %p682_p11 = scmp.lt.u32.totalorder %s673_s18, %s930_s10 }
  0x3a   : > { %p676_p1 = pnand %p675_p12, %p674_p6 }
  0x3b   : > { %p681_p9 = por %p680_p7, %p679_p5 }
  0x3c   : > { %p677_p2 = pneg %p676_p1 }
  0x3d   : > { %p683_p4 = por %p682_p11, %p681_p9 }
  0x3f   : > { %p684_p13 = pnand %p683_p4, %p677_p2 }
  0x41   : > { %687 = shalt.err (!%p684_p13)
}
  0x42   : > { %s688_s4 = scalar_lea.vmem %s935_s11, 2048  ;;  %s794_s5 = smov [#allocation5]  }
  0x43   : > { %p689_p0 = scmp.ne.s32.totalorder %s935_s11, %s688_s4  ;;  %s693_s27 = sshll.u32 %s794_s5, 4  ;;  %s694_s27 = int_to_ptr.vmem [resolvable:$false] %s693_s27 }
  0x44   : > { %s695_s7 = scalar_lea.vmem %s694_s27, 4096  ;;  %p696_p6 = scmp.lt.s32.totalorder %s935_s11, %s694_s27 }
  0x45   : > { %p691_p10 = pnand %p689_p0, %p675_p12  ;;  %p697_p1 = scmp.lt.s32.totalorder %s695_s7, %s688_s4 }
  0x47   : > { %p692_p3 = pneg %p691_p10  ;;  %p698_p5 = por %p697_p1, %p696_p6 }
  0x49   : > { %p699_p7 = pnand %p698_p5, %p692_p3 }
  0x4b   : > { %702 = shalt.err (!%p699_p7)
}
  0x4c   : > { %s795_s18 = smov 384   ;;  %s1080_s8 = smov 128  }
  0x4d   : > { %581 = dma.hbm_to_vmem [thread:$0]  (!%p1079_p8), %s930_s10, 2048, %s935_s11, %s937_s26, %s795_s18, %s1080_s8, %s793_s19  }
  0x4e   : > { %p1081_p12 = scmp.ne.s32.totalorder %s1076_s25, 0 }
  0x4f   : > { %p1082_p2 = scmp.ne.s32.totalorder (!%p1081_p12), %s1071_s20, 0 }
  0x50   : > { %200 = sbr.rel (%p1081_p12) target bundleno = 358 (0x166), region = 32 }
  0x57   : > { %756 = dma.done.wait (%p1082_p2), [#allocation3], 256  }
  0x58   : > { %758 = vsyncadd (%p1082_p2), [#allocation3], 4294967040  ;;  %s974_s28 = sand.u32 1, %s773_s13   ;;  %p1083_p8 = scmp.ne.s32.totalorder %s1073_s22, 0 }
  0x59   : > { %s474_s29 = sshll.u32 %s974_s28, 7  ;;  %s207_s6 = scalar_lea.sflag [#allocation6], %s974_s28 }
  0x5a   : > { %s978_s9 = scalar_lea.vmem [#allocation5], %s474_s29 }
  0x5b   : > { %760 = dma.done.wait (%p1083_p8), %s207_s6, 2048  }
  0x5c   : > { %762 = vsyncadd (%p1083_p8), %s207_s6, 4294965248  ;;  %v243_v0 = vld [vmem:[%s978_s9] sm:$0xff]  ;;  %v244_v1 = vld [vmem:[%s978_s9 + $0x8] sm:$0xff]  ;;  %p237_p9 = scmp.lt.s32.totalorder %s781_s15, 2  ;;  %s475_s20 = sshll.u32 %s974_s28, 4 }
  0x5d   : > { %v245_v2 = vld [vmem:[%s978_s9 + $0x10] sm:$0xff]  ;;  %v534_v3 = vpack.c.bf16 %v244_v1, %v243_v0  ;;  %v246_v4 = vld [vmem:[%s978_s9 + $0x18] sm:$0xff]  ;;  %v247_v6 = vld [vmem:[%s978_s9 + $0x20] sm:$0xff]  ;;  %s235_s11 = scalar_lea.vmem [#allocation7], %s475_s20  ;;  %s478_s4 = sshll.u32 %s781_s15, 7 }
  0x5e   : > { %v538_v5 = vpack.c.bf16 %v246_v4, %v245_v2  ;;  %v248_v7 = vld [vmem:[%s978_s9 + $0x28] sm:$0xff]  ;;  %v241_v9 = vld [vmem:[#allocation2] sm:$0xff]  ;;  %v250_v11 = vld [vmem:[%s978_s9 + $0x38] sm:$0xff]  ;;  %s238_s22 = scalar_select %p237_p9, %s781_s15, 2 }
  0x5f   : > { %535 = vmatprep.subr.bf16.mxu0 %v534_v3  ;;  %v542_v8 = vpack.c.bf16 %v248_v7, %v247_v6  ;;  %v249_v10 = vld [vmem:[%s978_s9 + $0x30] sm:$0xff]  ;;  %531 = vmatprep.mubr.f32.mxu0 %v241_v9  ;;  %v251_v13 = vld [vmem:[%s978_s9 + $0x40] sm:$0xff]  ;;  %v252_v14 = vld [vmem:[%s978_s9 + $0x48] sm:$0xff]  ;;  %s359_s26 = sshll.u32 %s235_s11, 4  ;;  %s1012_s7 = scalar_lea.hbm %s1063_s3, %s478_s4  ;;  %s1007_s26 = int_to_ptr.vmem [resolvable:$true] %s359_s26 }
  0x60   : > { %537 = vmatpush3.bf16.msra.mxu0 %v534_v3  ;;  %v546_v12 = vpack.c.bf16 %v250_v11, %v249_v10  ;;  %v550_v15 = vpack.c.bf16 %v252_v14, %v251_v13  ;;  %v253_v16 = vld [vmem:[%s978_s9 + $0x50] sm:$0xff]  ;;  %v254_v17 = vld [vmem:[%s978_s9 + $0x58] sm:$0xff]  ;;  %v255_v19 = vld [vmem:[%s978_s9 + $0x60] sm:$0xff]  ;;  %s239_s10 = scalar_lea.vmem %s1062_s2, %s238_s22  ;;  %s344_s18 = scalar_lea.sflag [#allocation4], %s974_s28 }
  0x61   : > { %539 = vmatprep.subr.bf16.mxu0 %v538_v5  ;;  %v554_v18 = vpack.c.bf16 %v254_v17, %v253_v16  ;;  %v256_v20 = vld [vmem:[%s978_s9 + $0x68] sm:$0xff]  ;;  %v257_v22 = vld [vmem:[%s978_s9 + $0x70] sm:$0xff]  ;;  %v258_v23 = vld [vmem:[%s978_s9 + $0x78] sm:$0xff]  ;;  %s703_s8 = scalar_lea.vmem %s1007_s26, 256  ;;  %p1084_p4 = scmp.ne.s32.totalorder %s1074_s23, 0 }
  0x62   : > { %v558_v21 = vpack.c.bf16 %v256_v20, %v255_v19  ;;  %v562_v24 = vpack.c.bf16 %v258_v23, %v257_v22  ;;  %v242_v25 = vld [vmem:[#allocation2 + $0x8] sm:$0xff]  ;;  %v476_v26 = vld [vmem:[%s239_s10] ss:$0 sm:$0xff]  ;;  %p704_p11 = scmp.ne.s32.totalorder %s1007_s26, %s703_s8  ;;  %s796_s15 = smov [#allocation7]  }
  0x63   : > { %s707_s29 = sshll.u32 %s796_s15, 4  ;;  %s708_s29 = int_to_ptr.vmem [resolvable:$false] %s707_s29 }
  0x64   : > { %541 = vmatpush3.bf16.msra.mxu0 %v538_v5  ;;  %p705_p13 = pnand %p704_p11, %p1084_p4  ;;  %s709_s6 = scalar_lea.vmem %s708_s29, 512 }
  0x65   : > { %543 = vmatprep.subr.bf16.mxu0 %v542_v8  ;;  %p710_p10 = scmp.lt.s32.totalorder %s1007_s26, %s708_s29  ;;  %p711_p3 = scmp.lt.s32.totalorder %s709_s6, %s703_s8 }
  0x66   : > { %p706_p0 = pneg %p705_p13 }
  0x67   : > { %p712_p6 = por %p711_p3, %p710_p10 }
  0x68   : > { %545 = vmatpush3.bf16.msra.mxu0 %v542_v8 }
  0x69   : > { %547 = vmatprep.subr.bf16.mxu0 %v546_v12  ;;  %p713_p1 = pnand %p712_p6, %p706_p0 }
  0x6c   : > { %549 = vmatpush3.bf16.msra.mxu0 %v546_v12 }
  0x6d   : > { %551 = vmatprep.subr.bf16.mxu0 %v550_v15 }
  0x70   : > { %553 = vmatpush3.bf16.msra.mxu0 %v550_v15 }
  0x71   : > { %555 = vmatprep.subr.bf16.mxu0 %v554_v18 }
  0x74   : > { %557 = vmatpush3.bf16.msra.mxu0 %v554_v18 }
  0x75   : > { %559 = vmatprep.subr.bf16.mxu0 %v558_v21 }
  0x78   : > { %561 = vmatpush3.bf16.msra.mxu0 %v558_v21 }
  0x79   : > { %563 = vmatprep.subr.bf16.mxu0 %v562_v24 }
  0x7c   : > { %565 = vmatpush3.bf16.msra.mxu0 %v562_v24 }
  0x7f   : > { %532 = vmatmul.mubr.f32.vlgmr.msra.gmra.mrb[0].mxu0 %v242_v25 }
 0x152   : > { %v533_v27 = vpop.f32.mrb[0].mxu0 }
 0x153   : > { %v338_v28 = vadd.f32 %v533_v27, %v476_v26  ;;  %v332_v29 = vpop.f32.mrb[1].mxu0 }
 0x154   : > { %v333_v30 = vadd.f32 %v476_v26, %v332_v29 }
 0x155   : > { %342 = vst [vmem:[%s235_s11 + $0x8] sm:$0xff] %v338_v28 }
 0x156   : > { %341 = vst [vmem:[%s235_s11] sm:$0xff] %v333_v30 }
 0x157   : > { %716 = shalt.err (!%p713_p1)
}
 0x158   : > { %s717_s9 = scalar_lea.hbm %s1012_s7, 256  ;;  %s721_s25 = scalar_lea.hbm %s1063_s3, 768 }
 0x159   : > { %p718_p5 = scmp.ne.s32.totalorder %s1012_s7, %s717_s9  ;;  %p722_p2 = scmp.lt.u32.totalorder %s1012_s7, %s1063_s3 }
 0x15a   : > { %p723_p8 = scmp.lt.u32.totalorder %s721_s25, %s717_s9  ;;  %p725_p11 = scmp.lt.u32.totalorder %s717_s9, %s1012_s7 }
 0x15b   : > { %p719_p7 = pnand %p718_p5, %p1084_p4 }
 0x15c   : > { %p724_p9 = por %p723_p8, %p722_p2 }
 0x15d   : > { %p720_p12 = pneg %p719_p7 }
 0x15e   : > { %p726_p13 = por %p725_p11, %p724_p9 }
 0x160   : > { %p727_p0 = pnand %p726_p13, %p720_p12 }
 0x162   : > { %730 = shalt.err (!%p727_p0)
}
 0x163   : > { %s797_s11 = smov 128   ;;  %s798_s4 = smov 384  }
 0x164   : > { %s799_s5 = smov 8  }
 0x165   : > { %572 = dma.vmem_to_hbm [thread:$0]  (%p1084_p4), %s1007_s26, 256, %s1012_s7, %s344_s18, %s797_s11, %s798_s4, %s799_s5  }
 0x166 PF: > { %p589_p10 = scmp.ge.s32.totalorder %s789_s17, 2  ;;  %s374_s27 = sand.u32 1, %s769_s12  }
 0x167   : > { %p1085_p3 = scmp.ne.s32.totalorder %s1075_s24, 0  ;;  %s375_s8 = scalar_lea.sflag [#allocation4], %s374_s27 }
 0x169   : > { %p583_p6 = pnand %p589_p10, %p1085_p3 }
 0x16b   : > { %764 = dma.done.wait (!%p583_p6), %s375_s8, 256  }
 0x16c   : > { %766 = vsyncadd (!%p583_p6), %s375_s8, 4294967040  ;;  %s20_s17 = sadd.s32 1, %s789_s17   ;;  %s1086_s12 = smov %s773_s13 }
 0x16d   : > { %p17_p1 = scmp.ge.s32.totalorder %s20_s17, 5   ;;  %s1087_s13 = smov %s777_s14 }
 0x16e   : > { %s1088_s14 = smov %s933_s21  ;;  %s1089_s15 = smov %s785_s16 }
 0x16f   : > { %s1090_s16 = smov %s1092_s30  ;;  %19 = sbr.rel (!%p17_p1) target bundleno = 7 (0x7), region = 86 }
 0x176   :  { %380 = vsyncpa [#allocation3], 1 }
 0x177   :  { %382 = vsyncpa [#allocation3 + $0x1], 1 }
 0x178   :  { %383 = vsyncpa [#allocation6], 1 }
 0x179   :  { %385 = vsyncpa [#allocation6 + $0x1], 1 }
 0x17a   :  { %386 = vsyncpa [#allocation4], 1 }
 0x17b   :  { %388 = vsyncpa [#allocation4 + $0x1], 1 }

</bundles_post_ra>
